<compile_context>
chip_gen: v6e
topology: v6e:2x2x1
jax: 0.10.0
libtpu: 0.0.40
codegen_flags: <defaults>
</compile_context>

<pallas_src>
import jax
import jax.numpy as jnp
from jax.experimental import pallas as pl
from jax.experimental.pallas import tpu as pltpu

SUBLANE = 8  # sublane tile width (second-to-last dim)


def _round_up(x, m):
    return (x + m - 1) // m * m


def _mlp_kernel(x_ref, w1_ref, b1_ref, w2_ref, b2_ref, o_ref):
    # fc1: [tb, in] @ [in, hidden] with f32 accumulation.  Cast x to the
    # weight dtype inside the kernel (VPU cast hides under the input DMA).
    x = x_ref[...].astype(w1_ref.dtype)
    h = jnp.dot(x, w1_ref[...], preferred_element_type=jnp.float32)
    # bias + ReLU in f32 (safe VPU path on all chips incl. v5e)
    h = jnp.maximum(h + b1_ref[...], 0.0)
    # fc2: [tb, hidden] @ [hidden, num_classes], f32 accumulation.
    out = jnp.dot(h.astype(w2_ref.dtype), w2_ref[...],
                  preferred_element_type=jnp.float32)
    o_ref[...] = (out + b2_ref[...]).astype(o_ref.dtype)


def _choose_tb(batch, block_b):
    """Pick a batch tile: multiple of 8 (or == batch), >=2 grid steps when possible."""
    if batch <= SUBLANE:
        return batch                      # single tiny block (full batch dim)
    # At least two grid steps so v7x's two TensorCores both get work; the
    # ragged tail block (if any) is masked by Pallas.
    half = _round_up(pl.cdiv(batch, 2), SUBLANE)
    return min(block_b, half)


def sleepiness_nn_forward(x, w1, b1, w2, b2, *, block_b=1024, dot_dtype=None):
    """Forward pass of SleepinessNN: relu(x @ W1 + b1) @ W2 + b2.

    x : [B, input_size]
    w1: [input_size, hidden_size]   (transpose of PyTorch fc1.weight)
    b1: [hidden_size]
    w2: [hidden_size, num_classes]  (transpose of PyTorch fc2.weight)
    b2: [num_classes]
    dot_dtype: optional matmul operand dtype (e.g. jnp.bfloat16 on v6e/v7x);
               accumulation is always f32.  Leave None on v5e.
    returns: [B, num_classes] in x.dtype
    """
    B, in_features = x.shape
    hidden = w1.shape[1]
    num_classes = w2.shape[1]

    w_dtype = dot_dtype if dot_dtype is not None else x.dtype
    # Weights/biases are tiny: pre-cast / reshape once in the wrapper.
    w1c = w1.astype(w_dtype)
    w2c = w2.astype(w_dtype)
    b1r = b1.astype(jnp.float32).reshape(1, hidden)
    b2r = b2.astype(jnp.float32).reshape(1, num_classes)

    tb = _choose_tb(B, block_b)
    grid = (pl.cdiv(B, tb),)

    itemsize = jnp.dtype(x.dtype).itemsize
    flops = 2 * B * (in_features * hidden + hidden * num_classes)
    bytes_accessed = (B * in_features * itemsize
                      + w1c.size * jnp.dtype(w_dtype).itemsize
                      + w2c.size * jnp.dtype(w_dtype).itemsize
                      + (hidden + num_classes) * 4
                      + B * num_classes * itemsize)

    out = pl.pallas_call(
        _mlp_kernel,
        out_shape=jax.ShapeDtypeStruct((B, num_classes), x.dtype),
        grid=grid,
        in_specs=[
            pl.BlockSpec((tb, in_features), lambda i: (i, 0)),       # x: batched
            pl.BlockSpec((in_features, hidden), lambda i: (0, 0)),   # W1: resident
            pl.BlockSpec((1, hidden), lambda i: (0, 0)),             # b1: resident
            pl.BlockSpec((hidden, num_classes), lambda i: (0, 0)),   # W2: resident
            pl.BlockSpec((1, num_classes), lambda i: (0, 0)),        # b2: resident
        ],
        out_specs=pl.BlockSpec((tb, num_classes), lambda i: (i, 0)),
        compiler_params=pltpu.CompilerParams(
            dimension_semantics=("parallel",),   # batch axis splits over TCs
        ),
        cost_estimate=pl.CostEstimate(
            flops=flops, transcendentals=0, bytes_accessed=bytes_accessed),
    )(x, w1c, b1r, w2c, b2r)

    return out


def init_params(key, input_size=5, hidden_size=32, num_classes=2):
    """Deterministic init mimicking nn.Linear's uniform(-1/sqrt(fan_in), ...)."""
    k1, k2, k3, k4 = jax.random.split(key, 4)
    bound1 = 1.0 / jnp.sqrt(input_size)
    bound2 = 1.0 / jnp.sqrt(hidden_size)
    w1 = jax.random.uniform(k1, (input_size, hidden_size), jnp.float32,
                            -bound1, bound1)
    b1 = jax.random.uniform(k2, (hidden_size,), jnp.float32, -bound1, bound1)
    w2 = jax.random.uniform(k3, (hidden_size, num_classes), jnp.float32,
                            -bound2, bound2)
    b2 = jax.random.uniform(k4, (num_classes,), jnp.float32, -bound2, bound2)
    return w1, b1, w2, b2


def _reference(x, w1, b1, w2, b2):
    return jnp.maximum(x @ w1 + b1, 0.0) @ w2 + b2


if __name__ == "__main__":
    input_size, hidden_size, num_classes = 5, 32, 2

    key = jax.random.PRNGKey(0)
    kx, kp = jax.random.split(key)
    w1, b1, w2, b2 = init_params(kp, input_size, hidden_size, num_classes)

    # --- f32 path, single block (batch == 8) ---
    batch = 8
    x = jax.random.normal(kx, (batch, input_size), jnp.float32)
    out = jax.block_until_ready(sleepiness_nn_forward(x, w1, b1, w2, b2))
    ref = _reference(x, w1, b1, w2, b2)
    assert out.shape == (batch, num_classes)
    assert jnp.allclose(out, ref, atol=1e-5, rtol=1e-5)

    # --- f32 path, multi-block with ragged tail (batch == 10 -> tb == 8) ---
    batch2 = 10
    x2 = jax.random.normal(jax.random.fold_in(kx, 1), (batch2, input_size),
                           jnp.float32)
    out2 = jax.block_until_ready(sleepiness_nn_forward(x2, w1, b1, w2, b2))
    ref2 = _reference(x2, w1, b1, w2, b2)
    assert out2.shape == (batch2, num_classes)
    assert jnp.allclose(out2, ref2, atol=1e-5, rtol=1e-5)

    # --- bf16-operand path (v6e/v7x fast MXU path), f32 accumulation ---
    out_bf16 = jax.block_until_ready(
        sleepiness_nn_forward(x, w1, b1, w2, b2, dot_dtype=jnp.bfloat16))
    assert out_bf16.shape == (batch, num_classes)
    assert jnp.allclose(out_bf16.astype(jnp.float32), ref,
                        atol=5e-2, rtol=5e-2)

    print("KERNEL_OK")
</pallas_src>

<mosaic_0001>
module attributes {stable_mosaic.version = 11 : i64} {
  func.func @_mlp_kernel(%arg0: i32, %arg1: memref<8x5xf32, #tpu.memory_space<vmem>>, %arg2: memref<5x32xf32, #tpu.memory_space<vmem>>, %arg3: memref<1x32xf32, #tpu.memory_space<vmem>>, %arg4: memref<32x2xf32, #tpu.memory_space<vmem>>, %arg5: memref<1x2xf32, #tpu.memory_space<vmem>>, %arg6: memref<8x2xf32, #tpu.memory_space<vmem>>) attributes {dimension_semantics = [#tpu.dimension_semantics<parallel>], iteration_bounds = array<i64: 1>, scalar_prefetch = 0 : i64, scratch_operands = 0 : i64, tpu.core_type = #tpu.core_type<tc>, window_params = [{transform_indices = @transform_0, window_bounds = array<i64: 8, 5>}, {pipeline_mode = #tpu.pipeline_mode<synchronous>, transform_indices = @transform_1, window_bounds = array<i64: 5, 32>}, {pipeline_mode = #tpu.pipeline_mode<synchronous>, transform_indices = @transform_2, window_bounds = array<i64: 1, 32>}, {pipeline_mode = #tpu.pipeline_mode<synchronous>, transform_indices = @transform_3, window_bounds = array<i64: 32, 2>}, {pipeline_mode = #tpu.pipeline_mode<synchronous>, transform_indices = @transform_4, window_bounds = array<i64: 1, 2>}, {transform_indices = @transform_5, window_bounds = array<i64: 8, 2>}]} {
    %c0 = arith.constant 0 : index
    %c0_0 = arith.constant 0 : index
    %0 = vector.load %arg1[%c0, %c0_0] : memref<8x5xf32, #tpu.memory_space<vmem>>, vector<8x5xf32>
    %c0_1 = arith.constant 0 : index
    %c0_2 = arith.constant 0 : index
    %1 = vector.load %arg2[%c0_1, %c0_2] : memref<5x32xf32, #tpu.memory_space<vmem>>, vector<5x32xf32>
    %cst = arith.constant dense<0.000000e+00> : vector<8x32xf32>
    %2 = tpu.matmul %0, %1, %cst {dimension_numbers = #tpu.dot_dimension_numbers<[1], [0], [0], [1], [0, 0, 1, 1], [], []>} : vector<8x5xf32>, vector<5x32xf32>, vector<8x32xf32> -> vector<8x32xf32>
    %c0_3 = arith.constant 0 : index
    %c0_4 = arith.constant 0 : index
    %3 = vector.load %arg3[%c0_3, %c0_4] : memref<1x32xf32, #tpu.memory_space<vmem>>, vector<1x32xf32>
    %4 = vector.broadcast %3 : vector<1x32xf32> to vector<8x32xf32>
    %5 = arith.addf %2, %4 : vector<8x32xf32>
    %cst_5 = arith.constant 0.000000e+00 : f32
    %6 = vector.broadcast %cst_5 : f32 to vector<8x32xf32>
    %7 = arith.maximumf %5, %6 : vector<8x32xf32>
    %c0_6 = arith.constant 0 : index
    %c0_7 = arith.constant 0 : index
    %8 = vector.load %arg4[%c0_6, %c0_7] : memref<32x2xf32, #tpu.memory_space<vmem>>, vector<32x2xf32>
    %cst_8 = arith.constant dense<0.000000e+00> : vector<8x2xf32>
    %9 = tpu.matmul %7, %8, %cst_8 {dimension_numbers = #tpu.dot_dimension_numbers<[1], [0], [0], [1], [0, 0, 1, 1], [], []>} : vector<8x32xf32>, vector<32x2xf32>, vector<8x2xf32> -> vector<8x2xf32>
    %c0_9 = arith.constant 0 : index
    %c0_10 = arith.constant 0 : index
    %10 = vector.load %arg5[%c0_9, %c0_10] : memref<1x2xf32, #tpu.memory_space<vmem>>, vector<1x2xf32>
    %11 = vector.broadcast %10 : vector<1x2xf32> to vector<8x2xf32>
    %12 = arith.addf %9, %11 : vector<8x2xf32>
    %c0_11 = arith.constant 0 : index
    %c0_12 = arith.constant 0 : index
    %13 = vector.load %arg6[%c0_11, %c0_12] : memref<8x2xf32, #tpu.memory_space<vmem>>, vector<8x2xf32>
    tpu.vector_store %arg6[%c0_11, %c0_12], %12 {strides = array<i32>} : memref<8x2xf32, #tpu.memory_space<vmem>>, vector<8x2xf32>,
    return
  }
  func.func @transform_0(%arg0: i32) -> (i32, i32) {
    %c0_i32 = arith.constant 0 : i32
    %c0_i32_0 = arith.constant 0 : i32
    return %arg0, %c0_i32 : i32, i32
  }
  func.func @transform_1(%arg0: i32) -> (i32, i32) {
    %c0_i32 = arith.constant 0 : i32
    %c0_i32_0 = arith.constant 0 : i32
    %c0_i32_1 = arith.constant 0 : i32
    return %c0_i32, %c0_i32_0 : i32, i32
  }
  func.func @transform_2(%arg0: i32) -> (i32, i32) {
    %c0_i32 = arith.constant 0 : i32
    %c0_i32_0 = arith.constant 0 : i32
    %c0_i32_1 = arith.constant 0 : i32
    return %c0_i32, %c0_i32_0 : i32, i32
  }
  func.func @transform_3(%arg0: i32) -> (i32, i32) {
    %c0_i32 = arith.constant 0 : i32
    %c0_i32_0 = arith.constant 0 : i32
    %c0_i32_1 = arith.constant 0 : i32
    return %c0_i32, %c0_i32_0 : i32, i32
  }
  func.func @transform_4(%arg0: i32) -> (i32, i32) {
    %c0_i32 = arith.constant 0 : i32
    %c0_i32_0 = arith.constant 0 : i32
    %c0_i32_1 = arith.constant 0 : i32
    return %c0_i32, %c0_i32_0 : i32, i32
  }
  func.func @transform_5(%arg0: i32) -> (i32, i32) {
    %c0_i32 = arith.constant 0 : i32
    %c0_i32_0 = arith.constant 0 : i32
    return %arg0, %c0_i32 : i32, i32
  }
}

</mosaic_0001>

<bundles_post_ra>
// kernel: tpu_custom_call.1
= control target key start
LH: loop header
LB: loop body
LE: loop exit
PB: predicated region body
PF: predicated region fallthrough
CT: control target
= control target key end

     0   :  { %vm33_vm0 = vcmask 1044480   ;;  %vm29_vm1 = vcmask 39936   ;;  %v229_v0 = vmov 0.0   ;;  %vm230_vm2 = vmmov 0   ;;  %s288_s1 = inlined_call_operand.vmem [shape: f32[5,32], index: 1, kind: input, shape index: {}]   ;;  %s289_s0 = inlined_call_operand.vmem [shape: f32[8,5], index: 0, kind: input, shape index: {}]   ;;  %s290_s3 = inlined_call_operand.vmem [shape: f32[32,2], index: 3, kind: input, shape index: {}]   ;;  %s291_s2 = inlined_call_operand.vmem [shape: f32[1,32], index: 2, kind: input, shape index: {}]   ;;  %s292_s4 = inlined_call_operand.vmem [shape: f32[1,2], index: 4, kind: input, shape index: {}]   ;;  %s293_s5 = inlined_call_operand.vmem [shape: f32[8,2], index: 5, kind: output, shape index: {}]  }
   0x1   :  { %211 = vmatprep.subr.mxu0 %v229_v0  ;;  %v21_v1 = vld [vmem:[%s288_s1] sm:$0x1f]  ;;  %213 = vmatprep.mubr.msk.f32.mxu0 %vm230_vm2, %v229_v0  ;;  %v111_v3 = vld [vmem:[%s290_s3 + $0x18] sm:$0xff]  ;;  %v110_v4 = vld [vmem:[%s290_s3 + $0x10] sm:$0xff]  ;;  %vm119_vm3 = vcmask 261120   ;;  %vm193_vm4 = vcmask 15360  }
   0x2   :  { %v20_v2 = vld [vmem:[%s289_s0] sm:$0xff]  ;;  %212 = vmatpush3.msk.msra.mxu0 %vm33_vm0, %v21_v1  ;;  %216 = vmatprep.subr.mxu1 %v229_v0  ;;  %v109_v5 = vld [vmem:[%s290_s3 + $0x8] sm:$0xff] }
   0x3   :  { %214 = vmatmul.mubr.msk.f32.vlgmr.msra.gmra.mxu0 %vm29_vm1, %v20_v2  ;;  %217 = vmatpush3.msra.mxu1 %v111_v3  ;;  %v108_v6 = vld [vmem:[%s290_s3] sm:$0xff] }
   0x4   :  { %218 = vmatprep.subr.mxu1 %v229_v0  ;;  %224 = vmatprep.mubr.msk.f32.mxu1 %vm230_vm2, %v229_v0  ;;  %v199_v7 = vld [vmem:[%s291_s2] ss:$0 sm:$0xff] }
   0x5   :  { %219 = vmatpush3.msra.mxu1 %v110_v4  ;;  %v202_v12 = vld [vmem:[%s292_s4] ss:$0 sm:$0xff] }
   0x6   :  { %220 = vmatprep.subr.mxu1 %v229_v0 }
   0x7   :  { %221 = vmatpush3.msra.mxu1 %v109_v5 }
   0x8   :  { %222 = vmatprep.subr.mxu1 %v229_v0 }
   0x9   :  { %223 = vmatpush3.msra.mxu1 %v108_v6 }
  0xc3   :  { %v103_v8 = vpop.f32.mrf.mxu0 }
  0xc4   :  { %v104_v9 = vadd.f32 %v199_v7, %v103_v8 }
  0xc5   :  { %v215_v10 = vpop.f32.mrf.mxu0 }
  0xc6   :  { %v107_v11 = vmax.f32 %v104_v9, 0.0 }
  0xc8   :  { %225 = vmatmul.mubr.msk.f32.vlgmr.msra.gmra.mxu1 %vm119_vm3, %v107_v11 }
 0x188   :  { %v189_v13 = vpop.f32.mrf.mxu1 }
 0x189   :  { %v190_v14 = vadd.f32 %v202_v12, %v189_v13 }
 0x18a   :  { %v226_v15 = vpop.f32.mrf.mxu1 }
 0x18b   :  { %194 = vst.msk [vmem:[%s293_s5] sm:$0xff] %vm193_vm4, %v190_v14 }

</bundles_post_ra>
